<compile_context>
chip_gen: v7x
topology: tpu7x:2x2x1
jax: 0.10.0
libtpu: 0.0.40
codegen_flags: <defaults>
</compile_context>

<pallas_src>
import functools

import numpy as np
import jax
import jax.numpy as jnp
from jax.experimental import pallas as pl
from jax.experimental.pallas import tpu as pltpu


# ----------------------------- config / sizes ------------------------------
CONFIG = dict(
    dqn_hidden_size=64,
    dqn_embedding_size=32,
    action_num=8,
    controllable_state_num=16,
    uncontrollable_state_num=16,
    uncontrollable_hidden_size=32,
    uncontrollable_pred_num=4,        # head exists in module; unused in forward()
    embeddingmerge="cat",
    activation_func="relu",
    use_bn=False,
    fixed_uncontrollable_param=True,
)
BATCH = 8

PAD = 128          # lane width of the deep layers (lane 127 reserved: bias constant)
NDEEP = 3          # fused 128x128 layers (L1 merge, dqn_fc1, dqn_fc2)


def _round_up(n, m):
    return (n + m - 1) // m * m


# ------------------------------- the kernel --------------------------------
def mixed_dqn_kernel(cs_ref, ucs_ref, w0c_ref, w0u_ref, w_ref, b0_ref, out_ref):
    """cs: (TB, C) f32; ucs: (TB, U) f32; w0c: (C,128) bf16; w0u: (U,128) bf16;
    w: (3,128,128) bf16; b0: (1,128) f32; out: (TB,128) f32."""
    f32 = jnp.float32
    bf16 = jnp.bfloat16
    relu = lambda v: jnp.maximum(v, 0.0)

    # L0: two small-K matmuls (K = C, U) replace the old 128-wide input slab.
    # b0 also plants the lane-127 constant (== 1.0) that carries folded biases.
    h = relu(
        jnp.dot(cs_ref[...].astype(bf16), w0c_ref[...], preferred_element_type=f32)
        + jnp.dot(ucs_ref[...].astype(bf16), w0u_ref[...], preferred_element_type=f32)
        + b0_ref[...]
    )
    # L1: identity ⊕ uncontrollable_fc2 (realizes the 'cat' merge); bias folded.
    h = relu(jnp.dot(h.astype(bf16), w_ref[0], preferred_element_type=f32))
    # L2: dqn_fc1; bias folded.
    h = relu(jnp.dot(h.astype(bf16), w_ref[1], preferred_element_type=f32))
    # L3: dqn_fc2 -> Q-values in lanes [0, action_num); bias folded; no activation.
    out_ref[...] = jnp.dot(h.astype(bf16), w_ref[2], preferred_element_type=f32)


# -------------------- one-time parameter packing (host) --------------------
def prepare_params(p, cfg):
    """Pack PyTorch-layout params into bf16 weight slabs + one f32 L0 bias row.

    Done ONCE outside the jit'd forward.  Zero / identity padding is exact
    (relu∘relu = relu, zero rows contribute 0); biases of layers 1-3 ride in
    row 127 against a lane-127 constant of 1.0.
    """
    C = cfg["controllable_state_num"]
    U = cfg["uncontrollable_state_num"]
    E = cfg["dqn_embedding_size"]
    Hu = cfg["uncontrollable_hidden_size"]
    Hd = cfg["dqn_hidden_size"]
    A = cfg["action_num"]
    # lane 127 is reserved for the bias constant; all live features must fit below.
    assert max(E + Hu, 2 * E, Hd, A) <= PAD - 1

    w0c = np.zeros((C, PAD), np.float32)
    w0u = np.zeros((U, PAD), np.float32)
    b0 = np.zeros((1, PAD), np.float32)
    w = np.zeros((NDEEP, PAD, PAD), np.float32)

    # L0: [cs | ucs] -> [cs_emb_pre (lanes 0:E) | h_pre (lanes E:E+Hu)]
    w0c[:, :E] = np.asarray(p["wc1"]).T
    w0u[:, E:E + Hu] = np.asarray(p["wu1"]).T
    b0[0, :E] = np.asarray(p["bc1"])
    b0[0, E:E + Hu] = np.asarray(p["bu1"])
    b0[0, PAD - 1] = 1.0          # constant lane; carries folded biases of L1..L3

    # L1: identity ⊕ uncontrollable_fc2 ('cat' merge layout; relu∘relu = relu)
    w[0, :E, :E] = np.eye(E, dtype=np.float32)
    w[0, E:E + Hu, E:2 * E] = np.asarray(p["wu2"]).T
    w[0, PAD - 1, E:2 * E] = np.asarray(p["bu2"])
    w[0, PAD - 1, PAD - 1] = 1.0   # keep the constant alive through relu

    # L2: dqn_fc1 on the concatenated embedding
    w[1, :2 * E, :Hd] = np.asarray(p["wd1"]).T
    w[1, PAD - 1, :Hd] = np.asarray(p["bd1"])
    w[1, PAD - 1, PAD - 1] = 1.0

    # L3: dqn_fc2 -> Q-values in lanes 0:A (no activation, constant not needed after)
    w[2, :Hd, :A] = np.asarray(p["wd2"]).T
    w[2, PAD - 1, :A] = np.asarray(p["bd2"])

    return (jnp.asarray(w0c, jnp.bfloat16),
            jnp.asarray(w0u, jnp.bfloat16),
            jnp.asarray(w, jnp.bfloat16),
            jnp.asarray(b0, jnp.float32))


# ------------------------------ python wrapper ------------------------------
def _choose_batch_tile(b_pad):
    """Big tiles for throughput; >= 2 even programs when there is enough work
    so the 'parallel' grid axis shards across both TensorCores on v7x."""
    if b_pad <= 256:
        return b_pad                       # single program; nothing worth splitting
    n = max(2, pl.cdiv(b_pad, 512))        # aim for ~512-row tiles
    if n % 2:
        n += 1                             # even program count -> balanced TC split
    return _round_up(pl.cdiv(b_pad, n), 8)


@functools.partial(jax.jit, static_argnames=("action_num",))
def mixed_dqn_forward(cs, ucs, w0c, w0u, w_slab, b0, *, action_num):
    B, C = cs.shape
    U = ucs.shape[1]

    B_pad = _round_up(B, 8)
    TB = _choose_batch_tile(B_pad)
    grid = pl.cdiv(B_pad, TB)
    B_full = grid * TB
    if B_full != B:                        # no-op at e.g. B = 8 (no extra launch)
        cs = jnp.pad(cs, ((0, B_full - B), (0, 0)))
        ucs = jnp.pad(ucs, ((0, B_full - B), (0, 0)))

    cost = pl.CostEstimate(
        flops=2 * B_full * ((C + U) * PAD + NDEEP * PAD * PAD),
        transcendentals=0,
        bytes_accessed=(4 * B_full * (C + U)          # f32 state inputs
                        + 2 * (C + U) * PAD           # bf16 L0 weights
                        + 2 * NDEEP * PAD * PAD       # bf16 deep weights
                        + 4 * PAD                     # f32 L0 bias row
                        + 4 * B_full * PAD),          # f32 output
    )

    out_pad = pl.pallas_call(
        mixed_dqn_kernel,
        out_shape=jax.ShapeDtypeStruct((B_full, PAD), jnp.float32),
        grid_spec=pltpu.PrefetchScalarGridSpec(
            num_scalar_prefetch=0,
            grid=(grid,),
            in_specs=[
                pl.BlockSpec((TB, C), lambda i: (i, 0)),               # controllable state
                pl.BlockSpec((TB, U), lambda i: (i, 0)),               # uncontrollable state
                pl.BlockSpec((C, PAD), lambda i: (0, 0)),              # L0 weights (resident)
                pl.BlockSpec((U, PAD), lambda i: (0, 0)),              # L0 weights (resident)
                pl.BlockSpec((NDEEP, PAD, PAD), lambda i: (0, 0, 0)),  # L1-L3 weights (resident)
                pl.BlockSpec((1, PAD), lambda i: (0, 0)),              # L0 bias + lane-127 const
            ],
            out_specs=pl.BlockSpec((TB, PAD), lambda i: (i, 0)),
        ),
        compiler_params=pltpu.CompilerParams(dimension_semantics=("parallel",)),
        cost_estimate=cost,
    )(cs, ucs, w0c, w0u, w_slab, b0)

    # Lane-dense kernel output; slice to the real Q width outside.
    # TODO(synk): if a large-batch profile shows the output write / this slice
    # dominating HBM traffic, let the consumer read the padded (B_full, 128)
    # layout directly and drop the slice.
    return out_pad[:B, :action_num]


# --------------------------- deterministic params ---------------------------
def init_params(key, cfg):
    E = cfg["dqn_embedding_size"]
    Hd = cfg["dqn_hidden_size"]
    A = cfg["action_num"]
    C = cfg["controllable_state_num"]
    U = cfg["uncontrollable_state_num"]
    Hu = cfg["uncontrollable_hidden_size"]

    def linear(key, out_f, in_f):
        kw, kb = jax.random.split(key)
        bound = 1.0 / jnp.sqrt(in_f)
        w = jax.random.uniform(kw, (out_f, in_f), jnp.float32, -bound, bound)
        bias = jax.random.uniform(kb, (out_f,), jnp.float32, -bound, bound)
        return w, bias

    keys = jax.random.split(key, 5)
    wc1, bc1 = linear(keys[0], E, C)            # controllable_embed_fc1
    wu1, bu1 = linear(keys[1], Hu, U)           # uncontrollable_embed_fc1
    wu2, bu2 = linear(keys[2], E, Hu)           # uncontrollable_embed_fc2
    wd1, bd1 = linear(keys[3], Hd, 2 * E)       # dqn_fc1 ('cat' merge → 2E inputs)
    wd2, bd2 = linear(keys[4], A, Hd)           # dqn_fc2
    return dict(wc1=wc1, bc1=bc1, wu1=wu1, bu1=bu1, wu2=wu2, bu2=bu2,
                wd1=wd1, bd1=bd1, wd2=wd2, bd2=bd2)


# ------------------------------ pure-JAX reference ---------------------------
def reference_forward(cs, ucs, p):
    relu = lambda v: jnp.maximum(v, 0.0)
    cs_emb = relu(cs @ p["wc1"].T + p["bc1"])
    h = relu(ucs @ p["wu1"].T + p["bu1"])
    ucs_emb = relu(h @ p["wu2"].T + p["bu2"])
    merged = jnp.concatenate([cs_emb, ucs_emb], axis=-1)
    x = relu(merged @ p["wd1"].T + p["bd1"])
    return x @ p["wd2"].T + p["bd2"]


if __name__ == "__main__":
    key = jax.random.PRNGKey(0)
    k_params, k_cs, k_ucs = jax.random.split(key, 3)

    params = init_params(k_params, CONFIG)
    # One-time packing (hoisted out of the per-call path).
    w0c, w0u, w_slab, b0 = prepare_params(params, CONFIG)

    cs = jax.random.normal(k_cs, (BATCH, CONFIG["controllable_state_num"]), jnp.float32)
    ucs = jax.random.normal(k_ucs, (BATCH, CONFIG["uncontrollable_state_num"]), jnp.float32)

    out = mixed_dqn_forward(cs, ucs, w0c, w0u, w_slab, b0,
                            action_num=CONFIG["action_num"])
    out = jax.block_until_ready(out)

    ref = reference_forward(cs, ucs, params)
    assert out.shape == (BATCH, CONFIG["action_num"])
    # bf16 weights / bf16 matmul operands (f32 accumulation): tolerance relaxed
    # vs the pure-f32 reference accordingly.
    assert jnp.allclose(out, ref, atol=5e-2, rtol=5e-2), "mismatch vs reference"

    print("KERNEL_OK")
</pallas_src>

<mosaic_0001>
module attributes {stable_mosaic.version = 11 : i64} {
  func.func @mixed_dqn_kernel(%arg0: i32, %arg1: memref<8x16xf32, #tpu.memory_space<vmem>>, %arg2: memref<8x16xf32, #tpu.memory_space<vmem>>, %arg3: memref<16x128xbf16, #tpu.memory_space<vmem>>, %arg4: memref<16x128xbf16, #tpu.memory_space<vmem>>, %arg5: memref<3x128x128xbf16, #tpu.memory_space<vmem>>, %arg6: memref<1x128xf32, #tpu.memory_space<vmem>>, %arg7: memref<8x128xf32, #tpu.memory_space<vmem>>) attributes {dimension_semantics = [#tpu.dimension_semantics<parallel>], iteration_bounds = array<i64: 1>, scalar_prefetch = 0 : i64, scratch_operands = 0 : i64, tpu.core_type = #tpu.core_type<tc>, window_params = [{transform_indices = @transform_0, window_bounds = array<i64: 8, 16>}, {transform_indices = @transform_1, window_bounds = array<i64: 8, 16>}, {pipeline_mode = #tpu.pipeline_mode<synchronous>, transform_indices = @transform_2, window_bounds = array<i64: 16, 128>}, {pipeline_mode = #tpu.pipeline_mode<synchronous>, transform_indices = @transform_3, window_bounds = array<i64: 16, 128>}, {pipeline_mode = #tpu.pipeline_mode<synchronous>, transform_indices = @transform_4, window_bounds = array<i64: 3, 128, 128>}, {pipeline_mode = #tpu.pipeline_mode<synchronous>, transform_indices = @transform_5, window_bounds = array<i64: 1, 128>}, {transform_indices = @transform_6, window_bounds = array<i64: 8, 128>}]} {
    %c0 = arith.constant 0 : index
    %c0_0 = arith.constant 0 : index
    %0 = vector.load %arg1[%c0, %c0_0] : memref<8x16xf32, #tpu.memory_space<vmem>>, vector<8x16xf32>
    %1 = arith.truncf %0 : vector<8x16xf32> to vector<8x16xbf16>
    %c0_1 = arith.constant 0 : index
    %c0_2 = arith.constant 0 : index
    %2 = vector.load %arg3[%c0_1, %c0_2] : memref<16x128xbf16, #tpu.memory_space<vmem>>, vector<16x128xbf16>
    %cst = arith.constant dense<0.000000e+00> : vector<8x128xf32>
    %3 = tpu.matmul %1, %2, %cst {dimension_numbers = #tpu.dot_dimension_numbers<[1], [0], [0], [1], [0, 0, 1, 1], [], []>} : vector<8x16xbf16>, vector<16x128xbf16>, vector<8x128xf32> -> vector<8x128xf32>
    %c0_3 = arith.constant 0 : index
    %c0_4 = arith.constant 0 : index
    %4 = vector.load %arg2[%c0_3, %c0_4] : memref<8x16xf32, #tpu.memory_space<vmem>>, vector<8x16xf32>
    %5 = arith.truncf %4 : vector<8x16xf32> to vector<8x16xbf16>
    %c0_5 = arith.constant 0 : index
    %c0_6 = arith.constant 0 : index
    %6 = vector.load %arg4[%c0_5, %c0_6] : memref<16x128xbf16, #tpu.memory_space<vmem>>, vector<16x128xbf16>
    %cst_7 = arith.constant dense<0.000000e+00> : vector<8x128xf32>
    %7 = tpu.matmul %5, %6, %cst_7 {dimension_numbers = #tpu.dot_dimension_numbers<[1], [0], [0], [1], [0, 0, 1, 1], [], []>} : vector<8x16xbf16>, vector<16x128xbf16>, vector<8x128xf32> -> vector<8x128xf32>
    %8 = arith.addf %3, %7 : vector<8x128xf32>
    %c0_8 = arith.constant 0 : index
    %c0_9 = arith.constant 0 : index
    %9 = vector.load %arg6[%c0_8, %c0_9] : memref<1x128xf32, #tpu.memory_space<vmem>>, vector<1x128xf32>
    %10 = vector.broadcast %9 : vector<1x128xf32> to vector<8x128xf32>
    %11 = arith.addf %8, %10 : vector<8x128xf32>
    %cst_10 = arith.constant 0.000000e+00 : f32
    %12 = vector.broadcast %cst_10 : f32 to vector<8x128xf32>
    %13 = arith.maximumf %11, %12 : vector<8x128xf32>
    %14 = arith.truncf %13 : vector<8x128xf32> to vector<8x128xbf16>
    %c0_11 = arith.constant 0 : index
    %c0_12 = arith.constant 0 : index
    %c0_13 = arith.constant 0 : index
    %15 = vector.load %arg5[%c0_11, %c0_12, %c0_13] : memref<3x128x128xbf16, #tpu.memory_space<vmem>>, vector<1x128x128xbf16>
    %16 = vector.shape_cast %15 : vector<1x128x128xbf16> to vector<128x128xbf16>
    %cst_14 = arith.constant dense<0.000000e+00> : vector<8x128xf32>
    %17 = tpu.matmul %14, %16, %cst_14 {dimension_numbers = #tpu.dot_dimension_numbers<[1], [0], [0], [1], [0, 0, 1, 1], [], []>} : vector<8x128xbf16>, vector<128x128xbf16>, vector<8x128xf32> -> vector<8x128xf32>
    %cst_15 = arith.constant 0.000000e+00 : f32
    %18 = vector.broadcast %cst_15 : f32 to vector<8x128xf32>
    %19 = arith.maximumf %17, %18 : vector<8x128xf32>
    %20 = arith.truncf %19 : vector<8x128xf32> to vector<8x128xbf16>
    %c1 = arith.constant 1 : index
    %c0_16 = arith.constant 0 : index
    %c0_17 = arith.constant 0 : index
    %21 = vector.load %arg5[%c1, %c0_16, %c0_17] : memref<3x128x128xbf16, #tpu.memory_space<vmem>>, vector<1x128x128xbf16>
    %22 = vector.shape_cast %21 : vector<1x128x128xbf16> to vector<128x128xbf16>
    %cst_18 = arith.constant dense<0.000000e+00> : vector<8x128xf32>
    %23 = tpu.matmul %20, %22, %cst_18 {dimension_numbers = #tpu.dot_dimension_numbers<[1], [0], [0], [1], [0, 0, 1, 1], [], []>} : vector<8x128xbf16>, vector<128x128xbf16>, vector<8x128xf32> -> vector<8x128xf32>
    %cst_19 = arith.constant 0.000000e+00 : f32
    %24 = vector.broadcast %cst_19 : f32 to vector<8x128xf32>
    %25 = arith.maximumf %23, %24 : vector<8x128xf32>
    %26 = arith.truncf %25 : vector<8x128xf32> to vector<8x128xbf16>
    %c2 = arith.constant 2 : index
    %c0_20 = arith.constant 0 : index
    %c0_21 = arith.constant 0 : index
    %27 = vector.load %arg5[%c2, %c0_20, %c0_21] : memref<3x128x128xbf16, #tpu.memory_space<vmem>>, vector<1x128x128xbf16>
    %28 = vector.shape_cast %27 : vector<1x128x128xbf16> to vector<128x128xbf16>
    %cst_22 = arith.constant dense<0.000000e+00> : vector<8x128xf32>
    %29 = tpu.matmul %26, %28, %cst_22 {dimension_numbers = #tpu.dot_dimension_numbers<[1], [0], [0], [1], [0, 0, 1, 1], [], []>} : vector<8x128xbf16>, vector<128x128xbf16>, vector<8x128xf32> -> vector<8x128xf32>
    %c0_23 = arith.constant 0 : index
    %c0_24 = arith.constant 0 : index
    %30 = vector.load %arg7[%c0_23, %c0_24] : memref<8x128xf32, #tpu.memory_space<vmem>>, vector<8x128xf32>
    tpu.vector_store %arg7[%c0_23, %c0_24], %29 {strides = array<i32>} : memref<8x128xf32, #tpu.memory_space<vmem>>, vector<8x128xf32>,
    return
  }
  func.func @transform_0(%arg0: i32) -> (i32, i32) {
    %c0_i32 = arith.constant 0 : i32
    %c0_i32_0 = arith.constant 0 : i32
    return %arg0, %c0_i32 : i32, i32
  }
  func.func @transform_1(%arg0: i32) -> (i32, i32) {
    %c0_i32 = arith.constant 0 : i32
    %c0_i32_0 = arith.constant 0 : i32
    return %arg0, %c0_i32 : i32, i32
  }
  func.func @transform_2(%arg0: i32) -> (i32, i32) {
    %c0_i32 = arith.constant 0 : i32
    %c0_i32_0 = arith.constant 0 : i32
    %c0_i32_1 = arith.constant 0 : i32
    return %c0_i32, %c0_i32_0 : i32, i32
  }
  func.func @transform_3(%arg0: i32) -> (i32, i32) {
    %c0_i32 = arith.constant 0 : i32
    %c0_i32_0 = arith.constant 0 : i32
    %c0_i32_1 = arith.constant 0 : i32
    return %c0_i32, %c0_i32_0 : i32, i32
  }
  func.func @transform_4(%arg0: i32) -> (i32, i32, i32) {
    %c0_i32 = arith.constant 0 : i32
    %c0_i32_0 = arith.constant 0 : i32
    %c0_i32_1 = arith.constant 0 : i32
    %c0_i32_2 = arith.constant 0 : i32
    return %c0_i32, %c0_i32_0, %c0_i32_1 : i32, i32, i32
  }
  func.func @transform_5(%arg0: i32) -> (i32, i32) {
    %c0_i32 = arith.constant 0 : i32
    %c0_i32_0 = arith.constant 0 : i32
    %c0_i32_1 = arith.constant 0 : i32
    return %c0_i32, %c0_i32_0 : i32, i32
  }
  func.func @transform_6(%arg0: i32) -> (i32, i32) {
    %c0_i32 = arith.constant 0 : i32
    %c0_i32_0 = arith.constant 0 : i32
    return %arg0, %c0_i32 : i32, i32
  }
}

</mosaic_0001>

<bundles_post_ra>
// kernel: mixed_dqn_forward.1
= control target key start
LH: loop header
LB: loop body
LE: loop exit
PB: predicated region body
PF: predicated region fallthrough
CT: control target
= control target key end

     0   :  { %11 = vsyncpa [#allocation3], 0  ;;  %s962_s0 = inlined_call_operand.hbm [shape: f32[8,16], index: 0, kind: input, shape index: {}]   ;;  %s963_s1 = inlined_call_operand.hbm [shape: f32[8,16], index: 1, kind: input, shape index: {}]   ;;  %s964_s2 = inlined_call_operand.hbm [shape: bf16[16,128], index: 2, kind: input, shape index: {}]   ;;  %s965_s3 = inlined_call_operand.vmem [shape: bf16[16,128], index: 3, kind: input, shape index: {}]   ;;  %s966_s4 = inlined_call_operand.hbm [shape: bf16[3,128,128], index: 4, kind: input, shape index: {}]   ;;  %s967_s5 = inlined_call_operand.vmem [shape: f32[1,128], index: 5, kind: input, shape index: {}]   ;;  %s968_s6 = inlined_call_operand.hbm [shape: f32[8,128], index: 6, kind: output, shape index: {}]  }
   0x1   :  { %12 = vsyncpa [#allocation6], 0 }
   0x2   :  { %13 = vsyncpa [#allocation9], 0 }
   0x3   :  { %14 = vsyncpa [#allocation4], 0  ;;  %s814_s21 = smov [#allocation5]   ;;  %s815_s23 = smov [#allocation2]  }
   0x4   :  { %s31_s22 = sshll.u32 %s814_s21, 4  ;;  %s21_s24 = sshll.u32 %s815_s23, 4  ;;  %s32_s22 = int_to_ptr.vmem [resolvable:$true] %s31_s22  ;;  %s22_s24 = int_to_ptr.vmem [resolvable:$true] %s21_s24 }
   0x5   :  { %s696_s27 = scalar_lea.hbm %s963_s1, 128 }
   0x6   :  { %p697_p0 = scmp.ne.s32.totalorder %s963_s1, %s696_s27  ;;  %p700_p1 = scmp.lt.u32.totalorder %s696_s27, %s963_s1 }
   0x8   :  { %p702_p2 = pnand %p700_p1, %p697_p0 }
   0xa   :  { %705 = shalt.err (!%p702_p2)
}
   0xb   :  { %s706_s8 = scalar_lea.vmem %s32_s22, 128  ;;  %p711_p4 = scmp.lt.s32.totalorder %s32_s22, %s32_s22 }
   0xc   :  { %p707_p3 = scmp.ne.s32.totalorder %s32_s22, %s706_s8  ;;  %p712_p5 = scmp.lt.s32.totalorder %s706_s8, %s706_s8 }
   0xe   :  { %p713_p6 = por %p712_p5, %p711_p4 }
  0x10   :  { %p714_p7 = pnand %p713_p6, %p707_p3 }
  0x12   :  { %717 = shalt.err (!%p714_p7)
}
  0x13   :  { %34 = dma.hbm_to_vmem [thread:$0]  %s963_s1, 128, %s32_s22, [#allocation6]  }
  0x14   :  { %s718_s13 = scalar_lea.hbm %s962_s0, 128 }
  0x15   :  { %p719_p8 = scmp.ne.s32.totalorder %s962_s0, %s718_s13  ;;  %p722_p9 = scmp.lt.u32.totalorder %s718_s13, %s962_s0 }
  0x17   :  { %p724_p10 = pnand %p722_p9, %p719_p8 }
  0x19   :  { %727 = shalt.err (!%p724_p10)
}
  0x1a   :  { %s728_s18 = scalar_lea.vmem %s22_s24, 128  ;;  %p733_p12 = scmp.lt.s32.totalorder %s22_s24, %s22_s24 }
  0x1b   :  { %p729_p11 = scmp.ne.s32.totalorder %s22_s24, %s728_s18  ;;  %p734_p13 = scmp.lt.s32.totalorder %s728_s18, %s728_s18 }
  0x1d   :  { %p735_p0 = por %p734_p13, %p733_p12 }
  0x1f   :  { %p736_p1 = pnand %p735_p0, %p729_p11 }
  0x21   :  { %739 = shalt.err (!%p736_p1)
}
  0x22   :  { %24 = dma.hbm_to_vmem [thread:$0]  %s962_s0, 128, %s22_s24, [#allocation3]  }
  0x23   :  { %s816_s20 = smov [#allocation7]   ;;  %s740_s25 = scalar_lea.hbm %s964_s2, 128 }
  0x24   :  { %s40_s21 = sshll.u32 %s816_s20, 4  ;;  %p741_p2 = scmp.ne.s32.totalorder %s964_s2, %s740_s25  ;;  %s41_s21 = int_to_ptr.vmem [resolvable:$true] %s40_s21 }
  0x25   :  { %p744_p3 = scmp.lt.u32.totalorder %s740_s25, %s964_s2 }
  0x27   :  { %p746_p4 = pnand %p744_p3, %p741_p2 }
  0x29   :  { %749 = shalt.err (!%p746_p4)
}
  0x2a   :  { %s750_s30 = scalar_lea.vmem %s41_s21, 128  ;;  %p755_p6 = scmp.lt.s32.totalorder %s41_s21, %s41_s21 }
  0x2b   :  { %p751_p5 = scmp.ne.s32.totalorder %s41_s21, %s750_s30  ;;  %p756_p7 = scmp.lt.s32.totalorder %s750_s30, %s750_s30 }
  0x2d   :  { %p757_p8 = por %p756_p7, %p755_p6 }
  0x2f   :  { %p758_p9 = pnand %p757_p8, %p751_p5 }
  0x31   :  { %761 = shalt.err (!%p758_p9)
}
  0x32   :  { %s817_s0 = smov 64   ;;  %s818_s24 = smov 4  }
  0x33   :  { %46 = dma.hbm_to_vmem [thread:$0]  %s964_s2, 128, %s41_s21, [#allocation6], %s817_s0, %s817_s0, %s818_s24  }
  0x34   :  { %s819_s9 = smov [#allocation8]   ;;  %s762_s13 = scalar_lea.hbm %s966_s4, 3072 }
  0x35   :  { %s54_s10 = sshll.u32 %s819_s9, 4  ;;  %p763_p10 = scmp.ne.s32.totalorder %s966_s4, %s762_s13  ;;  %s55_s10 = int_to_ptr.vmem [resolvable:$true] %s54_s10 }
  0x36   :  { %p766_p11 = scmp.lt.u32.totalorder %s762_s13, %s966_s4 }
  0x38   :  { %p768_p12 = pnand %p766_p11, %p763_p10 }
  0x3a   :  { %771 = shalt.err (!%p768_p12)
}
  0x3b   :  { %s772_s18 = scalar_lea.vmem %s55_s10, 3072  ;;  %p777_p0 = scmp.lt.s32.totalorder %s55_s10, %s55_s10 }
  0x3c   :  { %p773_p13 = scmp.ne.s32.totalorder %s55_s10, %s772_s18  ;;  %p778_p1 = scmp.lt.s32.totalorder %s772_s18, %s772_s18 }
  0x3e   :  { %p779_p2 = por %p778_p1, %p777_p0 }
  0x40   :  { %p780_p3 = pnand %p779_p2, %p773_p13 }
  0x42   :  { %783 = shalt.err (!%p780_p3)
}
  0x43   :  { %60 = dma.hbm_to_vmem [thread:$0]  %s966_s4, 3072, %s55_s10, [#allocation9], %s817_s0, %s817_s0, %s818_s24  }
  0x44   :  { %806 = dma.done.wait [#allocation3], 128  }
  0x45   :  { %807 = vsyncadd [#allocation3], 4294967168 }
  0x46   :  { %808 = dma.done.wait [#allocation6], 256  }
  0x47   :  { %809 = vsyncadd [#allocation6], 4294967040 }
  0x48   :  { %810 = dma.done.wait [#allocation9], 3072  }
  0x49   :  { %811 = vsyncadd [#allocation9], 4294964224  ;;  %v820_v0 = vmov 0.0   ;;  %vm821_vm0 = vmmov 0   ;;  %v670_v1 = vld [vmem:[%s965_s3] sm:$0xff]   ;;  %v80_v2 = vld [vmem:[#allocation5] sm:$0xff] }
  0x4a   :  { %589 = vmatprep.subr.bf16.mxu1 %v820_v0  ;;  %591 = vmatprep.mubr.msk.bf16.mxu1 %vm821_vm0, %v820_v0  ;;  %v81_v3 = vpack.c.bf16 %v80_v2, %v80_v2  ;;  %vm90_vm1 = vcmask 130048   ;;  %v671_v4 = vld [vmem:[#allocation7] sm:$0xff]   ;;  %v672_v5 = vld [vmem:[#allocation8] sm:$0xff]   ;;  %v673_v6 = vld [vmem:[#allocation8 + $0x8] sm:$0xff]  }
  0x4b   :  { %601 = vmatprep.subr.bf16.mxu0 %v820_v0  ;;  %617 = vmatprep.mubr.msk.bf16.mxu0 %vm821_vm0, %v820_v0  ;;  %v76_v7 = vld [vmem:[#allocation2] sm:$0xff]  ;;  %v674_v8 = vld [vmem:[#allocation8 + $0x10] sm:$0xff]   ;;  %v675_v10 = vld [vmem:[#allocation8 + $0x18] sm:$0xff]  }
  0x4c   :  { %590 = vmatpush3.bf16.msra.mxu1 %v670_v1  ;;  %602 = vmatpush3.bf16.msra.mxu0 %v672_v5  ;;  %v77_v9 = vpack.c.bf16 %v76_v7, %v76_v7  ;;  %v676_v11 = vld [vmem:[#allocation8 + $0x20] sm:$0xff]   ;;  %v677_v12 = vld [vmem:[#allocation8 + $0x28] sm:$0xff]   ;;  %v678_v13 = vld [vmem:[#allocation8 + $0x30] sm:$0xff]  }
  0x4d   :  { %595 = vmatprep.subr.bf16.mxu1 %v820_v0  ;;  %603 = vmatprep.subr.bf16.mxu0 %v820_v0  ;;  %v679_v14 = vld [vmem:[#allocation8 + $0x38] sm:$0xff]   ;;  %v680_v15 = vld [vmem:[#allocation8 + $0x40] sm:$0xff]   ;;  %v681_v16 = vld [vmem:[#allocation8 + $0x48] sm:$0xff]  }
  0x4e   :  { %v682_v17 = vld [vmem:[#allocation8 + $0x50] sm:$0xff]   ;;  %v683_v18 = vld [vmem:[#allocation8 + $0x58] sm:$0xff]   ;;  %v684_v19 = vld [vmem:[#allocation8 + $0x60] sm:$0xff]  }
  0x4f   :  { %592 = vmatmul.mubr.msk.bf16.vlgmr.msra.gmra.mrb[0].mxu1 %vm90_vm1, %v81_v3  ;;  %v685_v20 = vld [vmem:[#allocation8 + $0x68] sm:$0xff]   ;;  %v686_v21 = vld [vmem:[#allocation8 + $0x70] sm:$0xff]   ;;  %v687_v35 = vld [vmem:[#allocation8 + $0x78] sm:$0xff]  }
  0x50   :  { %596 = vmatpush3.bf16.msra.mxu1 %v671_v4  ;;  %597 = vmatprep.mubr.msk.bf16.mxu1 %vm821_vm0, %v820_v0  ;;  %v533_v27 = vld [vmem:[%s967_s5] ss:$0 sm:$0xff]  ;;  %v688_v36 = vld [vmem:[#allocation8 + $0x80] sm:$0xff]   ;;  %v690_v38 = vld [vmem:[#allocation8 + $0x90] sm:$0xff]   ;;  %s822_s5 = smov [#allocation10]  }
  0x51   :  { %621 = vmatprep.subr.bf16.mxu1 %v820_v0  ;;  %604 = vmatpush3.bf16.msra.mxu0 %v673_v6  ;;  %v689_v37 = vld [vmem:[#allocation8 + $0x88] sm:$0xff]   ;;  %v691_v39 = vld [vmem:[#allocation8 + $0x98] sm:$0xff]   ;;  %v692_v40 = vld [vmem:[#allocation8 + $0xa0] sm:$0xff]   ;;  %s518_s21 = sshll.u32 %s822_s5, 4  ;;  %s519_s21 = int_to_ptr.vmem [resolvable:$true] %s518_s21 }
  0x52   :  { %605 = vmatprep.subr.bf16.mxu0 %v820_v0  ;;  %v693_v41 = vld [vmem:[#allocation8 + $0xa8] sm:$0xff]   ;;  %v694_v42 = vld [vmem:[#allocation8 + $0xb0] sm:$0xff]   ;;  %v695_v49 = vld [vmem:[#allocation8 + $0xb8] sm:$0xff]   ;;  %s784_s22 = scalar_lea.vmem %s519_s21, 128  ;;  %p789_p5 = scmp.lt.s32.totalorder %s519_s21, %s519_s21 }
  0x53   :  { %p785_p4 = scmp.ne.s32.totalorder %s519_s21, %s784_s22  ;;  %p790_p6 = scmp.lt.s32.totalorder %s784_s22, %s784_s22 }
  0x55   :  { %606 = vmatpush3.bf16.msra.mxu0 %v674_v8  ;;  %p791_p7 = por %p790_p6, %p789_p5 }
  0x56   :  { %607 = vmatprep.subr.bf16.mxu0 %v820_v0 }
  0x57   :  { %598 = vmatmul.mubr.msk.bf16.vlgmr.msra.gmra.mrb[4].mxu1 %vm90_vm1, %v77_v9  ;;  %p792_p8 = pnand %p791_p7, %p785_p4 }
  0x58   :  { %637 = vmatprep.mubr.msk.bf16.mxu1 %vm821_vm0, %v820_v0  ;;  %622 = vmatpush3.bf16.msra.mxu1 %v680_v15 }
  0x59   :  { %608 = vmatpush3.bf16.msra.mxu0 %v675_v10  ;;  %623 = vmatprep.subr.bf16.mxu1 %v820_v0 }
  0x5a   :  { %609 = vmatprep.subr.bf16.mxu0 %v820_v0 }
  0x5c   :  { %624 = vmatpush3.bf16.msra.mxu1 %v681_v16 }
  0x5d   :  { %610 = vmatpush3.bf16.msra.mxu0 %v676_v11  ;;  %625 = vmatprep.subr.bf16.mxu1 %v820_v0 }
  0x5e   :  { %611 = vmatprep.subr.bf16.mxu0 %v820_v0 }
  0x60   :  { %626 = vmatpush3.bf16.msra.mxu1 %v682_v17 }
  0x61   :  { %612 = vmatpush3.bf16.msra.mxu0 %v677_v12  ;;  %627 = vmatprep.subr.bf16.mxu1 %v820_v0 }
  0x62   :  { %613 = vmatprep.subr.bf16.mxu0 %v820_v0 }
  0x64   :  { %628 = vmatpush3.bf16.msra.mxu1 %v683_v18 }
  0x65   :  { %614 = vmatpush3.bf16.msra.mxu0 %v678_v13  ;;  %629 = vmatprep.subr.bf16.mxu1 %v820_v0 }
  0x66   :  { %615 = vmatprep.subr.bf16.mxu0 %v820_v0 }
  0x68   :  { %630 = vmatpush3.bf16.msra.mxu1 %v684_v19 }
  0x69   :  { %616 = vmatpush3.bf16.msra.mxu0 %v679_v14  ;;  %631 = vmatprep.subr.bf16.mxu1 %v820_v0 }
  0x6a   :  { %641 = vmatprep.subr.bf16.mxu0 %v820_v0 }
  0x6c   :  { %632 = vmatpush3.bf16.msra.mxu1 %v685_v20 }
  0x6d   :  { %633 = vmatprep.subr.bf16.mxu1 %v820_v0 }
  0x70   :  { %634 = vmatpush3.bf16.msra.mxu1 %v686_v21 }
  0x71   :  { %635 = vmatprep.subr.bf16.mxu1 %v820_v0 }
  0x74   :  { %636 = vmatpush3.bf16.msra.mxu1 %v687_v35 }
 0x122   :  { %v128_v22 = vpop.f32.mrb[0].mxu1 }
 0x123   :  { %v593_v23 = vpop.f32.mrb[1].mxu1 }
 0x124   :  { %v131_v24 = vpop.f32.mrb[2].mxu1 }
 0x125   :  { %v594_v25 = vpop.f32.mrb[3].mxu1 }
 0x12a   :  { %v177_v26 = vpop.f32.mrb[4].mxu1 }
 0x12b   :  { %v178_v28 = vadd.f32 %v177_v26, %v128_v22  ;;  %v599_v29 = vpop.f32.mrb[5].mxu1 }
 0x12c   :  { %v180_v30 = vpop.f32.mrb[6].mxu1 }
 0x12d   :  { %v190_v31 = vadd.f32 %v533_v27, %v178_v28  ;;  %v600_v32 = vpop.f32.mrb[7].mxu1 }
 0x12f   :  { %v191_v33 = vmax.f32 %v190_v31, 0.0 }
 0x131   :  { %v192_v34 = vpack.c.bf16 %v191_v33, %v191_v33 }
 0x133   :  { %618 = vmatmul.mubr.bf16.vlgmr.msra.gmra.mrb[0].mxu0 %v192_v34 }
 0x134   :  { %657 = vmatprep.mubr.msk.bf16.mxu0 %vm821_vm0, %v820_v0  ;;  %642 = vmatpush3.bf16.msra.mxu0 %v688_v36 }
 0x135   :  { %643 = vmatprep.subr.bf16.mxu0 %v820_v0 }
 0x138   :  { %644 = vmatpush3.bf16.msra.mxu0 %v689_v37 }
 0x139   :  { %645 = vmatprep.subr.bf16.mxu0 %v820_v0 }
 0x13c   :  { %646 = vmatpush3.bf16.msra.mxu0 %v690_v38 }
 0x13d   :  { %647 = vmatprep.subr.bf16.mxu0 %v820_v0 }
 0x140   :  { %648 = vmatpush3.bf16.msra.mxu0 %v691_v39 }
 0x141   :  { %649 = vmatprep.subr.bf16.mxu0 %v820_v0 }
 0x144   :  { %650 = vmatpush3.bf16.msra.mxu0 %v692_v40 }
 0x145   :  { %651 = vmatprep.subr.bf16.mxu0 %v820_v0 }
 0x148   :  { %652 = vmatpush3.bf16.msra.mxu0 %v693_v41 }
 0x149   :  { %653 = vmatprep.subr.bf16.mxu0 %v820_v0 }
 0x14c   :  { %654 = vmatpush3.bf16.msra.mxu0 %v694_v42 }
 0x14d   :  { %655 = vmatprep.subr.bf16.mxu0 %v820_v0 }
 0x150   :  { %656 = vmatpush3.bf16.msra.mxu0 %v695_v49 }
 0x206   :  { %v291_v43 = vpop.f32.mrb[0].mxu0 }
 0x207   :  { %v297_v44 = vmax.f32 %v291_v43, 0.0  ;;  %v619_v45 = vpop.f32.mrb[1].mxu0 }
 0x208   :  { %v294_v46 = vpop.f32.mrb[2].mxu0 }
 0x209   :  { %v298_v47 = vpack.c.bf16 %v297_v44, %v297_v44  ;;  %v620_v48 = vpop.f32.mrb[3].mxu0 }
 0x20b   :  { %638 = vmatmul.mubr.bf16.vlgmr.msra.gmra.mrb[8].mxu1 %v298_v47 }
 0x2de   :  { %v398_v50 = vpop.f32.mrb[8].mxu1 }
 0x2df   :  { %v404_v51 = vmax.f32 %v398_v50, 0.0  ;;  %v639_v52 = vpop.f32.mrb[9].mxu1 }
 0x2e0   :  { %v401_v53 = vpop.f32.mrb[10].mxu1 }
 0x2e1   :  { %v405_v54 = vpack.c.bf16 %v404_v51, %v404_v51  ;;  %v640_v55 = vpop.f32.mrb[11].mxu1 }
 0x2e3   :  { %658 = vmatmul.mubr.bf16.vlgmr.msra.gmra.mrb[4].mxu0 %v405_v54 }
 0x3b6   :  { %v505_v56 = vpop.f32.mrb[4].mxu0 }
 0x3b7   :  { %511 = vst [vmem:[#allocation10] sm:$0xff] %v505_v56  ;;  %v659_v57 = vpop.f32.mrb[5].mxu0 }
 0x3b8   :  { %v508_v58 = vpop.f32.mrb[6].mxu0 }
 0x3b9   :  { %795 = shalt.err (!%p792_p8)
}
 0x3ba   :  { %s796_s26 = scalar_lea.hbm %s968_s6, 128 }
 0x3bb   :  { %p797_p9 = scmp.ne.s32.totalorder %s968_s6, %s796_s26  ;;  %p800_p10 = scmp.lt.u32.totalorder %s796_s26, %s968_s6 }
 0x3bd   :  { %p802_p11 = pnand %p800_p10, %p797_p9 }
 0x3bf   :  { %805 = shalt.err (!%p802_p11)
}
 0x3c0   :  { %521 = dma.vmem_to_hbm [thread:$0]  %s519_s21, 128, %s968_s6, [#allocation4]   ;;  %v660_v59 = vpop.f32.mrb[7].mxu0 }
 0x3c1   :  { %812 = dma.done.wait [#allocation4], 128  }
 0x3c2   :  { %813 = vsyncadd [#allocation4], 4294967168 }
 0x3c3   :  { %525 = vsyncpa [#allocation3], 1 }
 0x3c4   :  { %526 = vsyncpa [#allocation6], 1 }
 0x3c5   :  { %527 = vsyncpa [#allocation9], 1 }
 0x3c6   :  { %528 = vsyncpa [#allocation4], 1 }

</bundles_post_ra>
